<compile_context>
chip_gen: v7x
topology: tpu7x:2x2x1
jax: 0.10.0
libtpu: 0.0.40
codegen_flags: <defaults>
</compile_context>

<pallas_src>
import jax
import jax.numpy as jnp
from jax.experimental import pallas as pl
from jax.experimental.pallas import tpu as pltpu


def _add_pe_kernel(x_ref, pe_ref, o_ref):
    # x_ref: (bb, cb), pe_ref: (1, cb) -> broadcast add over the bb rows.
    # The add promotes to the widest dtype (matching torch's `x + pe`).
    o_ref[...] = (x_ref[...] + pe_ref[...]).astype(o_ref.dtype)


def _is_v7x():
    try:
        kind = jax.devices()[0].device_kind.lower()
    except Exception:
        return False
    return "v7" in kind


def _round_down_mult(x, m):
    return (x // m) * m


def flexible_positional_encoding(x, pos_embed, *, target_block_bytes=None,
                                 min_pallas_bytes=256 * 1024):
    """x: (B, T, D); pos_embed: (1, max_len, D) with max_len >= T."""
    B, T, D = x.shape
    if T > pos_embed.shape[1]:
        raise ValueError("Increase max_len for positional encoding.")

    # Identity interpolation (see header comment): pe == pos_embed[:, :T].
    pe = pos_embed[:, :T, :]

    out_dtype = jnp.result_type(x.dtype, pos_embed.dtype)
    xi = jnp.dtype(x.dtype).itemsize
    pi = jnp.dtype(pe.dtype).itemsize
    oi = jnp.dtype(out_dtype).itemsize

    F = T * D
    total_bytes = B * F * (xi + oi) + F * pi

    # Tiny-input fast path: pallas_call/pipeline setup (us) dwarfs the work.
    if total_bytes < min_pallas_bytes:
        return (x + pe).astype(out_dtype)

    is_v7 = _is_v7x()
    if target_block_bytes is None:
        # v7x has 64 MiB VMEM (half of v5e/v6e): stay near 2 MiB blocks there,
        # allow 4 MiB elsewhere.  1-4 MiB tiles sit at ~85-86% of the HBM
        # roofline for a pure add.
        target_block_bytes = (2 if is_v7 else 4) * 1024 * 1024

    # Lane-dense 2-D layout: flatten (T, D) -> F (row-major reshape, no copy).
    x2 = x.reshape(B, F)
    pe2 = pe.reshape(1, F)

    per_elem = xi + oi  # x read + out write bytes per element per block row

    # --- feature tile cb: full row if it fits, else a multiple of 128 -------
    if F * per_elem <= target_block_bytes:
        cb = F
    else:
        cb = max(128, _round_down_mult(target_block_bytes // per_elem, 128))

    # --- batch tile bb: full batch, or a multiple of 8 (sublane rule) -------
    rows_fit = max(1, target_block_bytes // (cb * per_elem))
    if rows_fit >= B:
        bb = B
    elif rows_fit >= 8:
        bb = _round_down_mult(rows_fit, 8)
    else:
        bb = min(B, 8)
        if cb < F:
            # keep the 8-row block near the target by shrinking the feature tile
            cb = max(128,
                     _round_down_mult(target_block_bytes // (bb * per_elem), 128))

    nf = pl.cdiv(F, cb)
    nb = pl.cdiv(B, bb)

    # --- v7x megacore only: ensure >= 2 parallel grid steps so both
    # TensorCores get work.  On single-core v5e/v6e this would just shrink
    # blocks and add per-step overhead, so it is gated.
    if is_v7 and nf * nb == 1 and F >= 256:
        half = (F + 1) // 2
        cb_split = ((half + 127) // 128) * 128
        if 128 <= cb_split < F:
            cb = cb_split
            nf = pl.cdiv(F, cb)

    grid = (nf, nb)  # feature-major: pe block index repeats over the inner
                     # batch loop, so its DMA is issued once per feature block.

    # --- explicit VMEM budget: 2 buffers each for x, out, pe blocks ---------
    vmem_est = 2 * (bb * cb * xi + bb * cb * oi + cb * pi)
    vmem_limit = int(min(64 * 1024 * 1024,
                         max(32 * 1024 * 1024, vmem_est + 8 * 1024 * 1024)))

    # Note: if the caller can donate x and x.dtype == out_dtype, passing
    # input_output_aliases={0: 0} removes the extra output allocation; left
    # off by default since an un-donated alias forces an XLA copy.
    out2 = pl.pallas_call(
        _add_pe_kernel,
        out_shape=jax.ShapeDtypeStruct((B, F), out_dtype),
        grid=grid,
        in_specs=[
            pl.BlockSpec((bb, cb), lambda f, b: (b, f)),   # x rows/cols
            pl.BlockSpec((1, cb), lambda f, b: (0, f)),    # pe (reused over b)
        ],
        out_specs=pl.BlockSpec((bb, cb), lambda f, b: (b, f)),
        compiler_params=pltpu.CompilerParams(
            dimension_semantics=("parallel", "parallel"),
            vmem_limit_bytes=vmem_limit,
        ),
    )(x2, pe2)

    return out2.reshape(B, T, D)


def flexible_positional_encoding_ref(x, pos_embed):
    T = x.shape[1]
    return x + pos_embed[:, :T, :]


if __name__ == "__main__":
    key = jax.random.PRNGKey(0)
    k1, k2, k3, k4 = jax.random.split(key, 4)

    # --- test 1: small canonical shape, forced through the Pallas kernel ----
    B, T, D = 2, 16, 32
    max_len = 256
    x = jax.random.normal(k1, (B, T, D), dtype=jnp.float32)
    pos_embed = jax.random.normal(k2, (1, max_len, D), dtype=jnp.float32)

    out = jax.block_until_ready(
        flexible_positional_encoding(x, pos_embed, min_pallas_bytes=0))
    ref = flexible_positional_encoding_ref(x, pos_embed)
    assert out.shape == ref.shape and out.dtype == ref.dtype
    assert jnp.allclose(out, ref, atol=1e-6, rtol=1e-6), "mismatch vs reference (test 1)"

    # --- test 2: exercise the 2-D (feature x batch) tiling path -------------
    B2, T2, D2 = 16, 64, 128
    x_big = jax.random.normal(k3, (B2, T2, D2), dtype=jnp.float32)
    pos_big = jax.random.normal(k4, (1, 128, D2), dtype=jnp.float32)
    out2 = jax.block_until_ready(
        flexible_positional_encoding(x_big, pos_big,
                                     target_block_bytes=32 * 1024,
                                     min_pallas_bytes=0))
    ref2 = flexible_positional_encoding_ref(x_big, pos_big)
    assert jnp.allclose(out2, ref2, atol=1e-6, rtol=1e-6), "mismatch vs reference (test 2)"

    # --- test 3: dtype promotion (bf16 x + f32 pe -> f32), like torch -------
    x_bf16 = x.astype(jnp.bfloat16)
    out3 = jax.block_until_ready(
        flexible_positional_encoding(x_bf16, pos_embed, min_pallas_bytes=0))
    ref3 = flexible_positional_encoding_ref(x_bf16, pos_embed)
    assert out3.dtype == jnp.float32
    assert jnp.allclose(out3, ref3, atol=1e-6, rtol=1e-6), "mismatch vs reference (test 3)"

    print("KERNEL_OK")
</pallas_src>

<mosaic_0001>
module attributes {stable_mosaic.version = 11 : i64} {
  func.func @_add_pe_kernel(%arg0: i32, %arg1: i32, %arg2: memref<2x512xf32, #tpu.memory_space<vmem>>, %arg3: memref<1x512xf32, #tpu.memory_space<vmem>>, %arg4: memref<2x512xf32, #tpu.memory_space<vmem>>) attributes {dimension_semantics = [#tpu.dimension_semantics<parallel>, #tpu.dimension_semantics<parallel>], iteration_bounds = array<i64: 1, 1>, scalar_prefetch = 0 : i64, scratch_operands = 0 : i64, tpu.core_type = #tpu.core_type<tc>, window_params = [{transform_indices = @transform_0, window_bounds = array<i64: 2, 512>}, {transform_indices = @transform_1, window_bounds = array<i64: 1, 512>}, {transform_indices = @transform_2, window_bounds = array<i64: 2, 512>}]} {
    %c0 = arith.constant 0 : index
    %c0_0 = arith.constant 0 : index
    %0 = vector.load %arg2[%c0, %c0_0] : memref<2x512xf32, #tpu.memory_space<vmem>>, vector<2x512xf32>
    %c0_1 = arith.constant 0 : index
    %c0_2 = arith.constant 0 : index
    %1 = vector.load %arg3[%c0_1, %c0_2] : memref<1x512xf32, #tpu.memory_space<vmem>>, vector<1x512xf32>
    %2 = vector.broadcast %1 : vector<1x512xf32> to vector<2x512xf32>
    %3 = arith.addf %0, %2 : vector<2x512xf32>
    %c0_3 = arith.constant 0 : index
    %c0_4 = arith.constant 0 : index
    %4 = vector.load %arg4[%c0_3, %c0_4] : memref<2x512xf32, #tpu.memory_space<vmem>>, vector<2x512xf32>
    tpu.vector_store %arg4[%c0_3, %c0_4], %3 {strides = array<i32>} : memref<2x512xf32, #tpu.memory_space<vmem>>, vector<2x512xf32>,
    return
  }
  func.func @transform_0(%arg0: i32, %arg1: i32) -> (i32, i32) {
    %c0_i32 = arith.constant 0 : i32
    return %arg1, %arg0 : i32, i32
  }
  func.func @transform_1(%arg0: i32, %arg1: i32) -> (i32, i32) {
    %c0_i32 = arith.constant 0 : i32
    %c0_i32_0 = arith.constant 0 : i32
    return %c0_i32, %arg0 : i32, i32
  }
  func.func @transform_2(%arg0: i32, %arg1: i32) -> (i32, i32) {
    %c0_i32 = arith.constant 0 : i32
    return %arg1, %arg0 : i32, i32
  }
}

</mosaic_0001>

<bundles_post_ra>
// kernel: tpu_custom_call.1
= control target key start
LH: loop header
LB: loop body
LE: loop exit
PB: predicated region body
PF: predicated region fallthrough
CT: control target
= control target key end

     0   :  { %7 = vsyncpa [#allocation3], 0  ;;  %s222_s0 = inlined_call_operand.hbm [shape: f32[2,512], index: 0, kind: input, shape index: {}]   ;;  %s223_s1 = inlined_call_operand.hbm [shape: f32[1,512], index: 1, kind: input, shape index: {}]   ;;  %s224_s2 = inlined_call_operand.hbm [shape: f32[2,512], index: 2, kind: output, shape index: {}]  }
   0x1   :  { %8 = vsyncpa [#allocation6], 0 }
   0x2   :  { %9 = vsyncpa [#allocation4], 0  ;;  %s167_s9 = smov [#allocation2]   ;;  %s168_s11 = smov [#allocation5]  }
   0x3   :  { %s16_s10 = sshll.u32 %s167_s9, 4  ;;  %s26_s12 = sshll.u32 %s168_s11, 4  ;;  %s17_s10 = int_to_ptr.vmem [resolvable:$true] %s16_s10  ;;  %s27_s12 = int_to_ptr.vmem [resolvable:$true] %s26_s12 }
   0x4   :  { %s95_s15 = scalar_lea.hbm %s222_s0, 128 }
   0x5   :  { %p96_p0 = scmp.ne.s32.totalorder %s222_s0, %s95_s15  ;;  %p99_p1 = scmp.lt.u32.totalorder %s95_s15, %s222_s0 }
   0x7   :  { %p101_p2 = pnand %p99_p1, %p96_p0 }
   0x9   :  { %104 = shalt.err (!%p101_p2)
}
   0xa   :  { %s105_s20 = scalar_lea.vmem %s17_s10, 128  ;;  %p110_p4 = scmp.lt.s32.totalorder %s17_s10, %s17_s10 }
   0xb   :  { %p106_p3 = scmp.ne.s32.totalorder %s17_s10, %s105_s20  ;;  %p111_p5 = scmp.lt.s32.totalorder %s105_s20, %s105_s20 }
   0xd   :  { %p112_p6 = por %p111_p5, %p110_p4 }
   0xf   :  { %p113_p7 = pnand %p112_p6, %p106_p3 }
  0x11   :  { %116 = shalt.err (!%p113_p7)
}
  0x12   :  { %19 = dma.hbm_to_vmem [thread:$0]  %s222_s0, 128, %s17_s10, [#allocation3]  }
  0x13   :  { %s117_s25 = scalar_lea.hbm %s223_s1, 64 }
  0x14   :  { %p118_p8 = scmp.ne.s32.totalorder %s223_s1, %s117_s25  ;;  %p121_p9 = scmp.lt.u32.totalorder %s117_s25, %s223_s1 }
  0x16   :  { %p123_p10 = pnand %p121_p9, %p118_p8 }
  0x18   :  { %126 = shalt.err (!%p123_p10)
}
  0x19   :  { %s127_s30 = scalar_lea.vmem %s27_s12, 64  ;;  %p132_p12 = scmp.lt.s32.totalorder %s27_s12, %s27_s12 }
  0x1a   :  { %p128_p11 = scmp.ne.s32.totalorder %s27_s12, %s127_s30  ;;  %p133_p13 = scmp.lt.s32.totalorder %s127_s30, %s127_s30 }
  0x1c   :  { %p134_p0 = por %p133_p13, %p132_p12 }
  0x1e   :  { %p135_p1 = pnand %p134_p0, %p128_p11 }
  0x20   :  { %138 = shalt.err (!%p135_p1)
}
  0x21   :  { %29 = dma.hbm_to_vmem [thread:$0]  %s223_s1, 64, %s27_s12, [#allocation6]  }
  0x22   :  { %161 = dma.done.wait [#allocation3], 128  }
  0x23   :  { %162 = vsyncadd [#allocation3], 4294967168 }
  0x24   :  { %163 = dma.done.wait [#allocation6], 64  }
  0x25   :  { %164 = vsyncadd [#allocation6], 4294967232  ;;  %v39_v0 = vlaneseq  ;;  %v169_v1 = vmov 1983009808   ;;  %v37_v9 = vld [vmem:[#allocation5] sm:$0xf] }
  0x26   :  { %v58_v2 = vunpack.c.l.s4 %v169_v1  ;;  %v36_v19 = vld [vmem:[#allocation2] sm:$0xff]  ;;  %s170_s1 = smov [#allocation7]  }
  0x27   :  { %v40_v3 = vshrl.u32 %v39_v0, 7  ;;  %s81_s4 = sshll.u32 %s170_s1, 4  ;;  %s82_s4 = int_to_ptr.vmem [resolvable:$true] %s81_s4 }
  0x28   :  { %v59_v4 = vunpack.c.0.s8 %v58_v2  ;;  %s139_s5 = scalar_lea.vmem %s82_s4, 128  ;;  %p144_p3 = scmp.lt.s32.totalorder %s82_s4, %s82_s4 }
  0x29   :  { %v41_v5 = vsub.s32 0, %v40_v3  ;;  %v45_v6 = vsub.s32 1, %v40_v3  ;;  %v49_v7 = vsub.s32 2, %v40_v3  ;;  %v53_v8 = vsub.s32 3, %v40_v3  ;;  %p140_p2 = scmp.ne.s32.totalorder %s82_s4, %s139_s5  ;;  %p145_p4 = scmp.lt.s32.totalorder %s139_s5, %s139_s5 }
  0x2a   :  { %v62_v10 = vsub.s32 %v59_v4, %v40_v3 }
  0x2b   :  { %v42_v11 = vrot.slane %v37_v9, %v41_v5  ;;  %v46_v12 = vrot.slane %v37_v9, %v45_v6  ;;  %v50_v13 = vrot.slane %v37_v9, %v49_v7  ;;  %v54_v14 = vrot.slane %v37_v9, %v53_v8  ;;  %p146_p5 = por %p145_p4, %p144_p3 }
  0x2d   :  { %v55_v15 = vcombine.low %v42_v11, %v46_v12  ;;  %v56_v16 = vcombine.low %v50_v13, %v54_v14  ;;  %p147_p6 = pnand %p146_p5, %p140_p2 }
  0x2f   :  { %v63_v17 = vrot.slane %v55_v15, %v62_v10  ;;  %v70_v18 = vrot.slane %v56_v16, %v62_v10 }
  0x31   :  { %v71_v20 = vcombine.low %v63_v17, %v70_v18 }
  0x33   :  { %v73_v21 = vadd.f32 %v71_v20, %v36_v19 }
  0x35   :  { %74 = vst [vmem:[#allocation7] sm:$0xff] %v73_v21 }
  0x36   :  { %150 = shalt.err (!%p147_p6)
}
  0x37   :  { %s151_s8 = scalar_lea.hbm %s224_s2, 128 }
  0x38   :  { %p152_p7 = scmp.ne.s32.totalorder %s224_s2, %s151_s8  ;;  %p155_p8 = scmp.lt.u32.totalorder %s151_s8, %s224_s2 }
  0x3a   :  { %p157_p9 = pnand %p155_p8, %p152_p7 }
  0x3c   :  { %160 = shalt.err (!%p157_p9)
}
  0x3d   :  { %84 = dma.vmem_to_hbm [thread:$0]  %s82_s4, 128, %s224_s2, [#allocation4]  }
  0x3e   :  { %165 = dma.done.wait [#allocation4], 128  }
  0x3f   :  { %166 = vsyncadd [#allocation4], 4294967168 }
  0x40   :  { %88 = vsyncpa [#allocation3], 1 }
  0x41   :  { %89 = vsyncpa [#allocation6], 1 }
  0x42   :  { %90 = vsyncpa [#allocation4], 1 }

</bundles_post_ra>
